<compile_context>
chip_gen: v7x
topology: tpu7x:2x2x1
jax: 0.10.0
libtpu: 0.0.40
codegen_flags: <defaults>
</compile_context>

<pallas_src>
import functools

import jax
import jax.numpy as jnp
from jax.experimental import pallas as pl
from jax.experimental.pallas import tpu as pltpu

LN_EPS = 1e-5  # nn.LayerNorm default


def _round_up(x, m):
    return ((x + m - 1) // m) * m


def _num_tensorcores():
    """2 TensorCores per chip on v7x, 1 on v5e/v6e (best-effort inference)."""
    try:
        kind = (jax.devices()[0].device_kind or "").lower()
        if "v7" in kind:
            return 2
    except Exception:
        pass
    return 1


def _ln_relu(h, gamma, beta, inv_n):
    """Fused one-pass LayerNorm + ReLU in f32.

    inv_n = 1 / real_width; zero-padded columns contribute 0 to both sums, and
    gamma/beta are 0 there, so padded columns come out exactly 0 after ReLU.
    """
    s1 = jnp.sum(h, axis=-1, keepdims=True)
    s2 = jnp.sum(h * h, axis=-1, keepdims=True)
    mean = s1 * inv_n
    var = s2 * inv_n - mean * mean
    h = (h - mean) * jax.lax.rsqrt(var + LN_EPS)
    return jnp.maximum(h * gamma + beta, 0.0)


def actor_kernel(
    x_ref,      # (TB, in_dim)          f32 activation tile (batch-tiled)
    w1_ref,     # (in_dim, fc1p)        bf16, VMEM-resident
    w2_ref,     # (fc1p, fc2p)          bf16, VMEM-resident
    w3_ref,     # (fc2p, n_actp)        bf16, VMEM-resident
    vec_ref,    # (8, D) packed slab:   rows b1,g1,be1,b2,g2,be2,b3,pad (f32)
    out_ref,    # (TB, n_actp)          f32, lane-dense
    *, fc1p, fc2p, n_actp, inv_fc1, inv_fc2,
):
    # ---- fc1 + LayerNorm + ReLU ----  (bf16 x bf16 -> f32 acc, single MXU pass)
    x = x_ref[...].astype(jnp.bfloat16)
    h = jnp.dot(x, w1_ref[...], preferred_element_type=jnp.float32)
    h = h + vec_ref[0:1, :fc1p]
    h = _ln_relu(h, vec_ref[1:2, :fc1p], vec_ref[2:3, :fc1p], inv_fc1)

    # ---- fc2 + LayerNorm + ReLU ----
    h = jnp.dot(h.astype(jnp.bfloat16), w2_ref[...],
                preferred_element_type=jnp.float32)
    h = h + vec_ref[3:4, :fc2p]
    h = _ln_relu(h, vec_ref[4:5, :fc2p], vec_ref[5:6, :fc2p], inv_fc2)

    # ---- mu layer + tanh ----  (padded output columns are tanh(0) = 0)
    mu = jnp.dot(h.astype(jnp.bfloat16), w3_ref[...],
                 preferred_element_type=jnp.float32)
    mu = mu + vec_ref[6:7, :n_actp]
    out_ref[...] = jnp.tanh(mu).astype(out_ref.dtype)


def actor_forward(state, packed, *, max_block_b=1024):
    """state: (B, in_dim) f32; packed = (w1, w2, w3, vec_slab, (fc1, fc2, n_act))."""
    w1, w2, w3, vec, real_dims = packed
    fc1, fc2, n_act = real_dims
    B, in_dim = state.shape
    fc1p, fc2p, n_actp = w1.shape[1], w2.shape[1], w3.shape[1]

    # ---- generation-aware batch tiling ----
    num_tc = _num_tensorcores()
    tb = min(_round_up(max(pl.cdiv(B, num_tc), 8), 8), max_block_b)
    steps = _round_up(pl.cdiv(B, tb), num_tc)          # grid multiple of #TCs
    tb = min(_round_up(max(pl.cdiv(B, steps), 8), 8), max_block_b)
    steps = pl.cdiv(B, tb)
    Bp = steps * tb
    if Bp != B:
        # Small ragged-tail pad only (at most tb-1 rows).
        state = jnp.pad(state, ((0, Bp - B), (0, 0)))
    grid = (steps,)

    kernel = functools.partial(
        actor_kernel, fc1p=fc1p, fc2p=fc2p, n_actp=n_actp,
        inv_fc1=1.0 / fc1, inv_fc2=1.0 / fc2)

    # ---- VMEM budget (double-buffered batch tiles, resident weights/slab,
    #      in-kernel hidden tiles), with 2x headroom ----
    weight_bytes = 2 * (in_dim * fc1p + fc1p * fc2p + fc2p * n_actp)   # bf16
    slab_bytes = 4 * vec.shape[0] * vec.shape[1]
    act_bytes = tb * in_dim * 4 + tb * n_actp * 4
    hidden_bytes = tb * (fc1p + fc2p) * (4 + 2)                        # f32 + bf16 copies
    need = 2 * (act_bytes + weight_bytes + slab_bytes) + hidden_bytes
    vmem_limit = int(min(max(2 * need, 8 << 20), 32 << 20))

    # ---- advisory cost estimate for XLA's scheduler ----
    flops = 2 * Bp * (in_dim * fc1p + fc1p * fc2p + fc2p * n_actp)
    transcendentals = Bp * (2 + n_actp)        # 2 rsqrt per row + tanh per output
    bytes_accessed = (Bp * in_dim * 4 + weight_bytes + slab_bytes
                      + Bp * n_actp * 4)
    cost = pl.CostEstimate(flops=flops, transcendentals=transcendentals,
                           bytes_accessed=bytes_accessed)

    out = pl.pallas_call(
        kernel,
        out_shape=jax.ShapeDtypeStruct((Bp, n_actp), jnp.float32),
        grid=grid,
        in_specs=[
            pl.BlockSpec((tb, in_dim), lambda i: (i, 0)),        # batch-tiled
            pl.BlockSpec((in_dim, fc1p), lambda i: (0, 0)),      # resident
            pl.BlockSpec((fc1p, fc2p), lambda i: (0, 0)),        # resident
            pl.BlockSpec((fc2p, n_actp), lambda i: (0, 0)),      # resident
            pl.BlockSpec(tuple(vec.shape), lambda i: (0, 0)),    # resident slab
        ],
        out_specs=pl.BlockSpec((tb, n_actp), lambda i: (i, 0)),  # lane-dense
        compiler_params=pltpu.CompilerParams(
            dimension_semantics=("parallel",),   # shard batch grid on v7x's 2 TCs
            vmem_limit_bytes=vmem_limit,
        ),
        cost_estimate=cost,
    )(state, w1, w2, w3, vec)
    return out[:B, :n_act]


def init_params(key, input_dim, fc1_dims, fc2_dims, n_actions):
    """f32 init matching the PyTorch module's __init__ semantics.

    PyTorch: f1 = 1/sqrt(fc1.weight.size()[0]) = 1/sqrt(fc1_dims), etc.
    Weights are kept as (in, out) so the kernel computes x @ W.
    """
    ks = jax.random.split(key, 6)
    f1 = 1.0 / jnp.sqrt(jnp.float32(fc1_dims))
    f2 = 1.0 / jnp.sqrt(jnp.float32(fc2_dims))
    f3 = 0.003

    w1 = jax.random.uniform(ks[0], (input_dim, fc1_dims), jnp.float32, -f1, f1)
    b1 = jax.random.uniform(ks[1], (1, fc1_dims), jnp.float32, -f1, f1)
    g1 = jnp.ones((1, fc1_dims), jnp.float32)
    be1 = jnp.zeros((1, fc1_dims), jnp.float32)

    w2 = jax.random.uniform(ks[2], (fc1_dims, fc2_dims), jnp.float32, -f2, f2)
    b2 = jax.random.uniform(ks[3], (1, fc2_dims), jnp.float32, -f2, f2)
    g2 = jnp.ones((1, fc2_dims), jnp.float32)
    be2 = jnp.zeros((1, fc2_dims), jnp.float32)

    w3 = jax.random.uniform(ks[4], (fc2_dims, n_actions), jnp.float32, -f3, f3)
    b3 = jax.random.uniform(ks[5], (1, n_actions), jnp.float32, -f3, f3)

    return (w1, b1, g1, be1, w2, b2, g2, be2, w3, b3)


def pack_params(params):
    """Kernel layout: bf16 weights zero-padded to 128-multiples on feature
    dims + one (8, D) f32 slab holding all bias / LayerNorm vectors."""
    (w1, b1, g1, be1, w2, b2, g2, be2, w3, b3) = params
    in_dim, fc1 = w1.shape
    fc2 = w2.shape[1]
    n_act = w3.shape[1]
    fc1p = _round_up(fc1, 128)
    fc2p = _round_up(fc2, 128)
    n_actp = _round_up(n_act, 128)
    D = max(fc1p, fc2p, n_actp)

    def pad_w(w, rows, cols):
        return jnp.pad(w, ((0, rows - w.shape[0]), (0, cols - w.shape[1])))

    w1p = pad_w(w1, in_dim, fc1p).astype(jnp.bfloat16)
    w2p = pad_w(w2, fc1p, fc2p).astype(jnp.bfloat16)
    w3p = pad_w(w3, fc2p, n_actp).astype(jnp.bfloat16)

    def row(v):
        v = v.reshape(1, -1).astype(jnp.float32)
        return jnp.pad(v, ((0, 0), (0, D - v.shape[1])))   # zero-pad (incl. gamma)

    vec = jnp.concatenate(
        [row(b1), row(g1), row(be1), row(b2), row(g2), row(be2), row(b3),
         jnp.zeros((1, D), jnp.float32)],
        axis=0,
    )
    return (w1p, w2p, w3p, vec, (fc1, fc2, n_act))


def actor_reference(state, packed):
    """Pure-JAX reference (f32 activations, two-pass LayerNorm) on the same
    (bf16-rounded) weights, using only the real (unpadded) widths."""
    w1, w2, w3, vec, real_dims = packed
    fc1, fc2, n_act = real_dims
    w1f = w1[:, :fc1].astype(jnp.float32)
    w2f = w2[:fc1, :fc2].astype(jnp.float32)
    w3f = w3[:fc2, :n_act].astype(jnp.float32)
    b1, g1, be1 = vec[0:1, :fc1], vec[1:2, :fc1], vec[2:3, :fc1]
    b2, g2, be2 = vec[3:4, :fc2], vec[4:5, :fc2], vec[5:6, :fc2]
    b3 = vec[6:7, :n_act]

    def ln(x, g, b):
        m = jnp.mean(x, axis=-1, keepdims=True)
        v = jnp.mean(jnp.square(x - m), axis=-1, keepdims=True)
        return (x - m) * jax.lax.rsqrt(v + LN_EPS) * g + b

    h = jnp.maximum(ln(state @ w1f + b1, g1, be1), 0.0)
    h = jnp.maximum(ln(h @ w2f + b2, g2, be2), 0.0)
    return jnp.tanh(h @ w3f + b3)


if __name__ == "__main__":
    # Small shapes consistent with the module's forward:
    # state: (batch, input_dim) = (8, 16); fc1=64, fc2=32, n_actions=4.
    B, INPUT_DIM, FC1, FC2, N_ACTIONS = 8, 16, 64, 32, 4

    key = jax.random.PRNGKey(0)
    k_state, k_params, k_big = jax.random.split(key, 3)
    raw_params = init_params(k_params, INPUT_DIM, FC1, FC2, N_ACTIONS)
    packed = pack_params(raw_params)

    # Small-batch check (single grid step).
    state = jax.random.normal(k_state, (B, INPUT_DIM), jnp.float32)
    mu = jax.block_until_ready(actor_forward(state, packed))
    ref = actor_reference(state, packed)
    assert mu.shape == (B, N_ACTIONS), mu.shape
    # Tolerance loosened vs the f32 reference because the kernel feeds bf16
    # operands to the MXU (f32 accumulation); outputs are tanh of O(1e-2).
    assert jnp.allclose(mu, ref, atol=3e-3, rtol=3e-2), (
        "Pallas kernel mismatch vs JAX reference (small batch): max |diff| = "
        f"{float(jnp.max(jnp.abs(mu - ref)))}"
    )

    # Larger batch to exercise the batch grid (one step on single-TC chips,
    # two 256-row steps sharded across v7x's TensorCores).
    big_state = jax.random.normal(k_big, (512, INPUT_DIM), jnp.float32)
    mu_big = jax.block_until_ready(actor_forward(big_state, packed))
    ref_big = actor_reference(big_state, packed)
    assert mu_big.shape == (512, N_ACTIONS), mu_big.shape
    assert jnp.allclose(mu_big, ref_big, atol=3e-3, rtol=3e-2), (
        "Pallas kernel mismatch vs JAX reference (batched grid): max |diff| = "
        f"{float(jnp.max(jnp.abs(mu_big - ref_big)))}"
    )

    print("KERNEL_OK")
</pallas_src>

<mosaic_0001>
module attributes {stable_mosaic.version = 11 : i64} {
  func.func @actor_kernel(%arg0: i32, %arg1: memref<8x16xf32, #tpu.memory_space<vmem>>, %arg2: memref<16x128xbf16, #tpu.memory_space<vmem>>, %arg3: memref<128x128xbf16, #tpu.memory_space<vmem>>, %arg4: memref<128x128xbf16, #tpu.memory_space<vmem>>, %arg5: memref<8x128xf32, #tpu.memory_space<vmem>>, %arg6: memref<8x128xf32, #tpu.memory_space<vmem>>) attributes {dimension_semantics = [#tpu.dimension_semantics<parallel>], iteration_bounds = array<i64: 1>, scalar_prefetch = 0 : i64, scratch_operands = 0 : i64, tpu.core_type = #tpu.core_type<tc>, window_params = [{transform_indices = @transform_0, window_bounds = array<i64: 8, 16>}, {pipeline_mode = #tpu.pipeline_mode<synchronous>, transform_indices = @transform_1, window_bounds = array<i64: 16, 128>}, {pipeline_mode = #tpu.pipeline_mode<synchronous>, transform_indices = @transform_2, window_bounds = array<i64: 128, 128>}, {pipeline_mode = #tpu.pipeline_mode<synchronous>, transform_indices = @transform_3, window_bounds = array<i64: 128, 128>}, {pipeline_mode = #tpu.pipeline_mode<synchronous>, transform_indices = @transform_4, window_bounds = array<i64: 8, 128>}, {transform_indices = @transform_5, window_bounds = array<i64: 8, 128>}]} {
    %c0 = arith.constant 0 : index
    %c0_0 = arith.constant 0 : index
    %0 = vector.load %arg1[%c0, %c0_0] : memref<8x16xf32, #tpu.memory_space<vmem>>, vector<8x16xf32>
    %1 = arith.truncf %0 : vector<8x16xf32> to vector<8x16xbf16>
    %c0_1 = arith.constant 0 : index
    %c0_2 = arith.constant 0 : index
    %2 = vector.load %arg2[%c0_1, %c0_2] : memref<16x128xbf16, #tpu.memory_space<vmem>>, vector<16x128xbf16>
    %cst = arith.constant dense<0.000000e+00> : vector<8x128xf32>
    %3 = tpu.matmul %1, %2, %cst {dimension_numbers = #tpu.dot_dimension_numbers<[1], [0], [0], [1], [0, 0, 1, 1], [], []>} : vector<8x16xbf16>, vector<16x128xbf16>, vector<8x128xf32> -> vector<8x128xf32>
    %c0_3 = arith.constant 0 : index
    %c0_4 = arith.constant 0 : index
    %4 = vector.load %arg5[%c0_3, %c0_4] : memref<8x128xf32, #tpu.memory_space<vmem>>, vector<1x128xf32>
    %5 = vector.broadcast %4 : vector<1x128xf32> to vector<8x128xf32>
    %6 = arith.addf %3, %5 : vector<8x128xf32>
    %c1 = arith.constant 1 : index
    %c0_5 = arith.constant 0 : index
    %7 = vector.load %arg5[%c1, %c0_5] : memref<8x128xf32, #tpu.memory_space<vmem>>, vector<1x128xf32>
    %c2 = arith.constant 2 : index
    %c0_6 = arith.constant 0 : index
    %8 = vector.load %arg5[%c2, %c0_6] : memref<8x128xf32, #tpu.memory_space<vmem>>, vector<1x128xf32>
    %cst_7 = arith.constant dense<0.000000e+00> : vector<8xf32>
    %9 = vector.multi_reduction <add>, %6, %cst_7 [1] : vector<8x128xf32> to vector<8xf32>
    %10 = vector.shape_cast %9 : vector<8xf32> to vector<8x1xf32>
    %11 = arith.mulf %6, %6 : vector<8x128xf32>
    %cst_8 = arith.constant dense<0.000000e+00> : vector<8xf32>
    %12 = vector.multi_reduction <add>, %11, %cst_8 [1] : vector<8x128xf32> to vector<8xf32>
    %13 = vector.shape_cast %12 : vector<8xf32> to vector<8x1xf32>
    %cst_9 = arith.constant 1.562500e-02 : f32
    %14 = vector.broadcast %cst_9 : f32 to vector<8x1xf32>
    %15 = arith.mulf %10, %14 : vector<8x1xf32>
    %cst_10 = arith.constant 1.562500e-02 : f32
    %16 = vector.broadcast %cst_10 : f32 to vector<8x1xf32>
    %17 = arith.mulf %13, %16 : vector<8x1xf32>
    %18 = arith.mulf %15, %15 : vector<8x1xf32>
    %19 = arith.subf %17, %18 : vector<8x1xf32>
    %20 = vector.broadcast %15 : vector<8x1xf32> to vector<8x128xf32>
    %21 = arith.subf %6, %20 : vector<8x128xf32>
    %cst_11 = arith.constant 9.99999974E-6 : f32
    %22 = vector.broadcast %cst_11 : f32 to vector<8x1xf32>
    %23 = arith.addf %19, %22 : vector<8x1xf32>
    %24 = math.rsqrt %23 : vector<8x1xf32>
    %25 = vector.broadcast %24 : vector<8x1xf32> to vector<8x128xf32>
    %26 = arith.mulf %21, %25 : vector<8x128xf32>
    %27 = vector.broadcast %7 : vector<1x128xf32> to vector<8x128xf32>
    %28 = arith.mulf %26, %27 : vector<8x128xf32>
    %29 = vector.broadcast %8 : vector<1x128xf32> to vector<8x128xf32>
    %30 = arith.addf %28, %29 : vector<8x128xf32>
    %cst_12 = arith.constant 0.000000e+00 : f32
    %31 = vector.broadcast %cst_12 : f32 to vector<8x128xf32>
    %32 = arith.maximumf %30, %31 : vector<8x128xf32>
    %33 = arith.truncf %32 : vector<8x128xf32> to vector<8x128xbf16>
    %c0_13 = arith.constant 0 : index
    %c0_14 = arith.constant 0 : index
    %34 = vector.load %arg3[%c0_13, %c0_14] : memref<128x128xbf16, #tpu.memory_space<vmem>>, vector<128x128xbf16>
    %cst_15 = arith.constant dense<0.000000e+00> : vector<8x128xf32>
    %35 = tpu.matmul %33, %34, %cst_15 {dimension_numbers = #tpu.dot_dimension_numbers<[1], [0], [0], [1], [0, 0, 1, 1], [], []>} : vector<8x128xbf16>, vector<128x128xbf16>, vector<8x128xf32> -> vector<8x128xf32>
    %c3 = arith.constant 3 : index
    %c0_16 = arith.constant 0 : index
    %36 = vector.load %arg5[%c3, %c0_16] : memref<8x128xf32, #tpu.memory_space<vmem>>, vector<1x128xf32>
    %37 = vector.broadcast %36 : vector<1x128xf32> to vector<8x128xf32>
    %38 = arith.addf %35, %37 : vector<8x128xf32>
    %c4 = arith.constant 4 : index
    %c0_17 = arith.constant 0 : index
    %39 = vector.load %arg5[%c4, %c0_17] : memref<8x128xf32, #tpu.memory_space<vmem>>, vector<1x128xf32>
    %c5 = arith.constant 5 : index
    %c0_18 = arith.constant 0 : index
    %40 = vector.load %arg5[%c5, %c0_18] : memref<8x128xf32, #tpu.memory_space<vmem>>, vector<1x128xf32>
    %cst_19 = arith.constant dense<0.000000e+00> : vector<8xf32>
    %41 = vector.multi_reduction <add>, %38, %cst_19 [1] : vector<8x128xf32> to vector<8xf32>
    %42 = vector.shape_cast %41 : vector<8xf32> to vector<8x1xf32>
    %43 = arith.mulf %38, %38 : vector<8x128xf32>
    %cst_20 = arith.constant dense<0.000000e+00> : vector<8xf32>
    %44 = vector.multi_reduction <add>, %43, %cst_20 [1] : vector<8x128xf32> to vector<8xf32>
    %45 = vector.shape_cast %44 : vector<8xf32> to vector<8x1xf32>
    %cst_21 = arith.constant 3.125000e-02 : f32
    %46 = vector.broadcast %cst_21 : f32 to vector<8x1xf32>
    %47 = arith.mulf %42, %46 : vector<8x1xf32>
    %cst_22 = arith.constant 3.125000e-02 : f32
    %48 = vector.broadcast %cst_22 : f32 to vector<8x1xf32>
    %49 = arith.mulf %45, %48 : vector<8x1xf32>
    %50 = arith.mulf %47, %47 : vector<8x1xf32>
    %51 = arith.subf %49, %50 : vector<8x1xf32>
    %52 = vector.broadcast %47 : vector<8x1xf32> to vector<8x128xf32>
    %53 = arith.subf %38, %52 : vector<8x128xf32>
    %cst_23 = arith.constant 9.99999974E-6 : f32
    %54 = vector.broadcast %cst_23 : f32 to vector<8x1xf32>
    %55 = arith.addf %51, %54 : vector<8x1xf32>
    %56 = math.rsqrt %55 : vector<8x1xf32>
    %57 = vector.broadcast %56 : vector<8x1xf32> to vector<8x128xf32>
    %58 = arith.mulf %53, %57 : vector<8x128xf32>
    %59 = vector.broadcast %39 : vector<1x128xf32> to vector<8x128xf32>
    %60 = arith.mulf %58, %59 : vector<8x128xf32>
    %61 = vector.broadcast %40 : vector<1x128xf32> to vector<8x128xf32>
    %62 = arith.addf %60, %61 : vector<8x128xf32>
    %cst_24 = arith.constant 0.000000e+00 : f32
    %63 = vector.broadcast %cst_24 : f32 to vector<8x128xf32>
    %64 = arith.maximumf %62, %63 : vector<8x128xf32>
    %65 = arith.truncf %64 : vector<8x128xf32> to vector<8x128xbf16>
    %c0_25 = arith.constant 0 : index
    %c0_26 = arith.constant 0 : index
    %66 = vector.load %arg4[%c0_25, %c0_26] : memref<128x128xbf16, #tpu.memory_space<vmem>>, vector<128x128xbf16>
    %cst_27 = arith.constant dense<0.000000e+00> : vector<8x128xf32>
    %67 = tpu.matmul %65, %66, %cst_27 {dimension_numbers = #tpu.dot_dimension_numbers<[1], [0], [0], [1], [0, 0, 1, 1], [], []>} : vector<8x128xbf16>, vector<128x128xbf16>, vector<8x128xf32> -> vector<8x128xf32>
    %c6 = arith.constant 6 : index
    %c0_28 = arith.constant 0 : index
    %68 = vector.load %arg5[%c6, %c0_28] : memref<8x128xf32, #tpu.memory_space<vmem>>, vector<1x128xf32>
    %69 = vector.broadcast %68 : vector<1x128xf32> to vector<8x128xf32>
    %70 = arith.addf %67, %69 : vector<8x128xf32>
    %71 = math.tanh %70 : vector<8x128xf32>
    %c0_29 = arith.constant 0 : index
    %c0_30 = arith.constant 0 : index
    %72 = vector.load %arg6[%c0_29, %c0_30] : memref<8x128xf32, #tpu.memory_space<vmem>>, vector<8x128xf32>
    tpu.vector_store %arg6[%c0_29, %c0_30], %71 {strides = array<i32>} : memref<8x128xf32, #tpu.memory_space<vmem>>, vector<8x128xf32>,
    return
  }
  func.func @transform_0(%arg0: i32) -> (i32, i32) {
    %c0_i32 = arith.constant 0 : i32
    %c0_i32_0 = arith.constant 0 : i32
    return %arg0, %c0_i32 : i32, i32
  }
  func.func @transform_1(%arg0: i32) -> (i32, i32) {
    %c0_i32 = arith.constant 0 : i32
    %c0_i32_0 = arith.constant 0 : i32
    %c0_i32_1 = arith.constant 0 : i32
    return %c0_i32, %c0_i32_0 : i32, i32
  }
  func.func @transform_2(%arg0: i32) -> (i32, i32) {
    %c0_i32 = arith.constant 0 : i32
    %c0_i32_0 = arith.constant 0 : i32
    %c0_i32_1 = arith.constant 0 : i32
    return %c0_i32, %c0_i32_0 : i32, i32
  }
  func.func @transform_3(%arg0: i32) -> (i32, i32) {
    %c0_i32 = arith.constant 0 : i32
    %c0_i32_0 = arith.constant 0 : i32
    %c0_i32_1 = arith.constant 0 : i32
    return %c0_i32, %c0_i32_0 : i32, i32
  }
  func.func @transform_4(%arg0: i32) -> (i32, i32) {
    %c0_i32 = arith.constant 0 : i32
    %c0_i32_0 = arith.constant 0 : i32
    %c0_i32_1 = arith.constant 0 : i32
    return %c0_i32, %c0_i32_0 : i32, i32
  }
  func.func @transform_5(%arg0: i32) -> (i32, i32) {
    %c0_i32 = arith.constant 0 : i32
    %c0_i32_0 = arith.constant 0 : i32
    return %arg0, %c0_i32 : i32, i32
  }
}

</mosaic_0001>

<bundles_post_ra>
// kernel: tpu_custom_call.1
= control target key start
LH: loop header
LB: loop body
LE: loop exit
PB: predicated region body
PF: predicated region fallthrough
CT: control target
= control target key end

     0   :  { %10 = vsyncpa [#allocation3], 0  ;;  %s815_s0 = inlined_call_operand.hbm [shape: f32[8,16], index: 0, kind: input, shape index: {}]   ;;  %s816_s1 = inlined_call_operand.hbm [shape: bf16[16,128], index: 1, kind: input, shape index: {}]   ;;  %s817_s2 = inlined_call_operand.hbm [shape: bf16[128,128], index: 2, kind: input, shape index: {}]   ;;  %s818_s3 = inlined_call_operand.hbm [shape: bf16[128,128], index: 3, kind: input, shape index: {}]   ;;  %s819_s4 = inlined_call_operand.vmem [shape: f32[8,128], index: 4, kind: input, shape index: {}]   ;;  %s820_s5 = inlined_call_operand.hbm [shape: f32[8,128], index: 5, kind: output, shape index: {}]  }
   0x1   :  { %11 = vsyncpa [#allocation6], 0 }
   0x2   :  { %12 = vsyncpa [#allocation9], 0 }
   0x3   :  { %13 = vsyncpa [#allocation4], 0  ;;  %s666_s18 = smov [#allocation5]   ;;  %s548_s22 = scalar_lea.hbm %s816_s1, 128 }
   0x4   :  { %s29_s19 = sshll.u32 %s666_s18, 4  ;;  %p549_p0 = scmp.ne.s32.totalorder %s816_s1, %s548_s22  ;;  %s30_s19 = int_to_ptr.vmem [resolvable:$true] %s29_s19 }
   0x5   :  { %p552_p1 = scmp.lt.u32.totalorder %s548_s22, %s816_s1 }
   0x7   :  { %p554_p2 = pnand %p552_p1, %p549_p0 }
   0x9   :  { %557 = shalt.err (!%p554_p2)
}
   0xa   :  { %s558_s27 = scalar_lea.vmem %s30_s19, 128  ;;  %p563_p4 = scmp.lt.s32.totalorder %s30_s19, %s30_s19 }
   0xb   :  { %p559_p3 = scmp.ne.s32.totalorder %s30_s19, %s558_s27  ;;  %p564_p5 = scmp.lt.s32.totalorder %s558_s27, %s558_s27 }
   0xd   :  { %p565_p6 = por %p564_p5, %p563_p4 }
   0xf   :  { %p566_p7 = pnand %p565_p6, %p559_p3 }
  0x11   :  { %569 = shalt.err (!%p566_p7)
}
  0x12   :  { %s667_s28 = smov 64   ;;  %s668_s29 = smov 4  }
  0x13   :  { %35 = dma.hbm_to_vmem [thread:$0]  %s816_s1, 128, %s30_s19, [#allocation6], %s667_s28, %s667_s28, %s668_s29  }
  0x14   :  { %s669_s7 = smov [#allocation2]   ;;  %s670_s9 = smov [#allocation7]  }
  0x15   :  { %s20_s8 = sshll.u32 %s669_s7, 4  ;;  %s41_s10 = sshll.u32 %s670_s9, 4  ;;  %s21_s8 = int_to_ptr.vmem [resolvable:$true] %s20_s8  ;;  %s42_s10 = int_to_ptr.vmem [resolvable:$true] %s41_s10 }
  0x16   :  { %s570_s13 = scalar_lea.hbm %s815_s0, 128 }
  0x17   :  { %p571_p8 = scmp.ne.s32.totalorder %s815_s0, %s570_s13  ;;  %p574_p9 = scmp.lt.u32.totalorder %s570_s13, %s815_s0 }
  0x19   :  { %p576_p10 = pnand %p574_p9, %p571_p8 }
  0x1b   :  { %579 = shalt.err (!%p576_p10)
}
  0x1c   :  { %s580_s1 = scalar_lea.vmem %s21_s8, 128  ;;  %p585_p12 = scmp.lt.s32.totalorder %s21_s8, %s21_s8 }
  0x1d   :  { %p581_p11 = scmp.ne.s32.totalorder %s21_s8, %s580_s1  ;;  %p586_p13 = scmp.lt.s32.totalorder %s580_s1, %s580_s1 }
  0x1f   :  { %p587_p0 = por %p586_p13, %p585_p12 }
  0x21   :  { %p588_p1 = pnand %p587_p0, %p581_p11 }
  0x23   :  { %591 = shalt.err (!%p588_p1)
}
  0x24   :  { %23 = dma.hbm_to_vmem [thread:$0]  %s815_s0, 128, %s21_s8, [#allocation3]  }
  0x25   :  { %s592_s22 = scalar_lea.hbm %s817_s2, 1024 }
  0x26   :  { %p593_p2 = scmp.ne.s32.totalorder %s817_s2, %s592_s22  ;;  %p596_p3 = scmp.lt.u32.totalorder %s592_s22, %s817_s2 }
  0x28   :  { %p598_p4 = pnand %p596_p3, %p593_p2 }
  0x2a   :  { %601 = shalt.err (!%p598_p4)
}
  0x2b   :  { %s602_s27 = scalar_lea.vmem %s42_s10, 1024  ;;  %p607_p6 = scmp.lt.s32.totalorder %s42_s10, %s42_s10 }
  0x2c   :  { %p603_p5 = scmp.ne.s32.totalorder %s42_s10, %s602_s27  ;;  %p608_p7 = scmp.lt.s32.totalorder %s602_s27, %s602_s27 }
  0x2e   :  { %p609_p8 = por %p608_p7, %p607_p6 }
  0x30   :  { %p610_p9 = pnand %p609_p8, %p603_p5 }
  0x32   :  { %613 = shalt.err (!%p610_p9)
}
  0x33   :  { %47 = dma.hbm_to_vmem [thread:$0]  %s817_s2, 1024, %s42_s10, [#allocation6], %s667_s28, %s667_s28, %s668_s29  }
  0x34   :  { %s671_s6 = smov [#allocation8]   ;;  %s614_s11 = scalar_lea.hbm %s818_s3, 1024 }
  0x35   :  { %s53_s7 = sshll.u32 %s671_s6, 4  ;;  %p615_p10 = scmp.ne.s32.totalorder %s818_s3, %s614_s11  ;;  %s54_s7 = int_to_ptr.vmem [resolvable:$true] %s53_s7 }
  0x36   :  { %p618_p11 = scmp.lt.u32.totalorder %s614_s11, %s818_s3 }
  0x38   :  { %p620_p12 = pnand %p618_p11, %p615_p10 }
  0x3a   :  { %623 = shalt.err (!%p620_p12)
}
  0x3b   :  { %s624_s16 = scalar_lea.vmem %s54_s7, 1024  ;;  %p629_p0 = scmp.lt.s32.totalorder %s54_s7, %s54_s7 }
  0x3c   :  { %p625_p13 = scmp.ne.s32.totalorder %s54_s7, %s624_s16  ;;  %p630_p1 = scmp.lt.s32.totalorder %s624_s16, %s624_s16 }
  0x3e   :  { %p631_p2 = por %p630_p1, %p629_p0 }
  0x40   :  { %p632_p3 = pnand %p631_p2, %p625_p13 }
  0x42   :  { %635 = shalt.err (!%p632_p3)
}
  0x43   :  { %59 = dma.hbm_to_vmem [thread:$0]  %s818_s3, 1024, %s54_s7, [#allocation9], %s667_s28, %s667_s28, %s668_s29  }
  0x44   :  { %658 = dma.done.wait [#allocation3], 128  }
  0x45   :  { %659 = vsyncadd [#allocation3], 4294967168 }
  0x46   :  { %660 = dma.done.wait [#allocation6], 1152  }
  0x47   :  { %661 = vsyncadd [#allocation6], 4294966144 }
  0x48   :  { %662 = dma.done.wait [#allocation9], 1024  }
  0x49   :  { %663 = vsyncadd [#allocation9], 4294966272  ;;  %v672_v0 = vmov 0.0   ;;  %vm673_vm0 = vmmov 0   ;;  %v525_v1 = vld [vmem:[#allocation5] sm:$0xff]   ;;  %v75_v2 = vld [vmem:[#allocation2] sm:$0xff] }
  0x4a   :  { %470 = vmatprep.subr.bf16.mxu0 %v672_v0  ;;  %472 = vmatprep.mubr.msk.bf16.mxu0 %vm673_vm0, %v672_v0  ;;  %vm90_vm1 = vcmask 130048   ;;  %v76_v3 = vpack.c.bf16 %v75_v2, %v75_v2  ;;  %v425_v4 = vld [vmem:[%s819_s4] ss:$0 sm:$0xff]  ;;  %v526_v11 = vld [vmem:[#allocation7] sm:$0xff]   ;;  %v527_v12 = vld [vmem:[#allocation7 + $0x8] sm:$0xff]   ;;  %s674_s27 = smov [#allocation10]  }
  0x4b   :  { %476 = vmatprep.subr.bf16.mxu1 %v672_v0  ;;  %492 = vmatprep.mubr.msk.bf16.mxu1 %vm673_vm0, %v672_v0  ;;  %v528_v13 = vld [vmem:[#allocation7 + $0x10] sm:$0xff]   ;;  %v529_v14 = vld [vmem:[#allocation7 + $0x18] sm:$0xff]   ;;  %v530_v15 = vld [vmem:[#allocation7 + $0x20] sm:$0xff]   ;;  %s414_s0 = sshll.u32 %s674_s27, 4  ;;  %s415_s0 = int_to_ptr.vmem [resolvable:$true] %s414_s0 }
  0x4c   :  { %471 = vmatpush3.bf16.msra.mxu0 %v525_v1  ;;  %477 = vmatpush3.bf16.msra.mxu1 %v526_v11  ;;  %v531_v16 = vld [vmem:[#allocation7 + $0x28] sm:$0xff]   ;;  %v532_v17 = vld [vmem:[#allocation7 + $0x30] sm:$0xff]   ;;  %v533_v18 = vld [vmem:[#allocation7 + $0x38] sm:$0xff]   ;;  %s636_s30 = scalar_lea.vmem %s415_s0, 128  ;;  %p641_p5 = scmp.lt.s32.totalorder %s415_s0, %s415_s0 }
  0x4d   :  { %496 = vmatprep.subr.bf16.mxu0 %v672_v0  ;;  %478 = vmatprep.subr.bf16.mxu1 %v672_v0  ;;  %v428_v28 = vld [vmem:[%s819_s4 + $0x1] ss:$0 sm:$0xff]  ;;  %v429_v30 = vld [vmem:[%s819_s4 + $0x2] ss:$0 sm:$0xff]  ;;  %v430_v35 = vld [vmem:[%s819_s4 + $0x3] ss:$0 sm:$0xff]  ;;  %p637_p4 = scmp.ne.s32.totalorder %s415_s0, %s636_s30  ;;  %p642_p6 = scmp.lt.s32.totalorder %s636_s30, %s636_s30 }
  0x4e   :  { %v534_v42 = vld [vmem:[#allocation8] sm:$0xff]   ;;  %v535_v43 = vld [vmem:[#allocation8 + $0x8] sm:$0xff]   ;;  %v536_v44 = vld [vmem:[#allocation8 + $0x10] sm:$0xff]  }
  0x4f   :  { %473 = vmatmul.mubr.msk.bf16.vlgmr.msra.gmra.mrb[0].mxu0 %vm90_vm1, %v76_v3  ;;  %v537_v45 = vld [vmem:[#allocation8 + $0x18] sm:$0xff]   ;;  %v538_v46 = vld [vmem:[#allocation8 + $0x20] sm:$0xff]   ;;  %v539_v47 = vld [vmem:[#allocation8 + $0x28] sm:$0xff]   ;;  %p643_p7 = por %p642_p6, %p641_p5 }
  0x50   :  { %512 = vmatprep.mubr.msk.bf16.mxu0 %vm673_vm0, %v672_v0  ;;  %479 = vmatpush3.bf16.msra.mxu1 %v527_v12  ;;  %v540_v48 = vld [vmem:[#allocation8 + $0x30] sm:$0xff]   ;;  %v541_v49 = vld [vmem:[#allocation8 + $0x38] sm:$0xff]  }
  0x51   :  { %480 = vmatprep.subr.bf16.mxu1 %v672_v0  ;;  %497 = vmatpush3.bf16.msra.mxu0 %v534_v42  ;;  %v439_v59 = vld [vmem:[%s819_s4 + $0x4] ss:$0 sm:$0xff]  ;;  %v440_v61 = vld [vmem:[%s819_s4 + $0x5] ss:$0 sm:$0xff]  ;;  %v441_v2 = vld [vmem:[%s819_s4 + $0x6] ss:$0 sm:$0xff]  ;;  %p644_p8 = pnand %p643_p7, %p637_p4 }
  0x52   :  { %498 = vmatprep.subr.bf16.mxu0 %v672_v0 }
  0x54   :  { %481 = vmatpush3.bf16.msra.mxu1 %v528_v13 }
  0x55   :  { %482 = vmatprep.subr.bf16.mxu1 %v672_v0  ;;  %499 = vmatpush3.bf16.msra.mxu0 %v535_v43 }
  0x56   :  { %500 = vmatprep.subr.bf16.mxu0 %v672_v0 }
  0x58   :  { %483 = vmatpush3.bf16.msra.mxu1 %v529_v14 }
  0x59   :  { %484 = vmatprep.subr.bf16.mxu1 %v672_v0  ;;  %501 = vmatpush3.bf16.msra.mxu0 %v536_v44 }
  0x5a   :  { %502 = vmatprep.subr.bf16.mxu0 %v672_v0 }
  0x5c   :  { %485 = vmatpush3.bf16.msra.mxu1 %v530_v15 }
  0x5d   :  { %486 = vmatprep.subr.bf16.mxu1 %v672_v0  ;;  %503 = vmatpush3.bf16.msra.mxu0 %v537_v45 }
  0x5e   :  { %504 = vmatprep.subr.bf16.mxu0 %v672_v0 }
  0x60   :  { %487 = vmatpush3.bf16.msra.mxu1 %v531_v16 }
  0x61   :  { %488 = vmatprep.subr.bf16.mxu1 %v672_v0  ;;  %505 = vmatpush3.bf16.msra.mxu0 %v538_v46 }
  0x62   :  { %506 = vmatprep.subr.bf16.mxu0 %v672_v0 }
  0x64   :  { %489 = vmatpush3.bf16.msra.mxu1 %v532_v17 }
  0x65   :  { %490 = vmatprep.subr.bf16.mxu1 %v672_v0  ;;  %507 = vmatpush3.bf16.msra.mxu0 %v539_v47 }
  0x66   :  { %508 = vmatprep.subr.bf16.mxu0 %v672_v0 }
  0x68   :  { %491 = vmatpush3.bf16.msra.mxu1 %v533_v18 }
  0x69   :  { %509 = vmatpush3.bf16.msra.mxu0 %v540_v48 }
  0x6a   :  { %510 = vmatprep.subr.bf16.mxu0 %v672_v0 }
  0x6d   :  { %511 = vmatpush3.bf16.msra.mxu0 %v541_v49 }
 0x122   :  { %v128_v5 = vpop.f32.mrb[0].mxu0 }
 0x123   :  { %v129_v6 = vadd.f32 %v425_v4, %v128_v5  ;;  %v474_v7 = vpop.f32.mrb[1].mxu0 }
 0x124   :  { %v131_v8 = vpop.f32.mrb[2].mxu0 }
 0x125   :  { %136 = vadd.xlane.f32.xlu0 %v129_v6  ;;  %v475_v9 = vpop.f32.mrb[3].mxu0  ;;  %v138_v10 = vmul.f32 %v129_v6, %v129_v6 }
 0x129   :  { %139 = vadd.xlane.f32.xlu0 %v138_v10 }
 0x1b2   :  { %v137_v19 = vpop.xlane.xlu0 %136 }
 0x1b3   :  { %v141_v20 = vmul.f32 0.015625, %v137_v19 }
 0x1b5   :  { %v143_v22 = vmul.f32 %v141_v20, %v141_v20  ;;  %v145_v26 = vsub.f32 %v129_v6, %v141_v20 }
 0x1b6   :  { %v140_v21 = vpop.xlane.xlu0 %139 }
 0x1b7   :  { %v142_v23 = vmul.f32 0.015625, %v140_v21 }
 0x1b9   :  { %v144_v24 = vsub.f32 %v142_v23, %v143_v22 }
 0x1bb   :  { %v146_v25 = vadd.f32 1e-05, %v144_v24 }
 0x1bd   :  { %542 = vrsqrt.f32 %v146_v25 }
 0x1c7   :  { %v543_v27 = vpop.eup %542 }
 0x1c8   :  { %v148_v29 = vmul.f32 %v543_v27, %v145_v26 }
 0x1ca   :  { %v153_v31 = vmul.f32 %v428_v28, %v148_v29 }
 0x1cc   :  { %v158_v32 = vadd.f32 %v429_v30, %v153_v31 }
 0x1ce   :  { %v159_v33 = vmax.f32 %v158_v32, 0.0 }
 0x1d0   :  { %v160_v34 = vpack.c.bf16 %v159_v33, %v159_v33 }
 0x1d2   :  { %493 = vmatmul.mubr.bf16.vlgmr.msra.gmra.mrb[0].mxu1 %v160_v34 }
 0x2a5   :  { %v264_v36 = vpop.f32.mrb[0].mxu1 }
 0x2a6   :  { %v265_v37 = vadd.f32 %v430_v35, %v264_v36  ;;  %v494_v38 = vpop.f32.mrb[1].mxu1 }
 0x2a7   :  { %v267_v39 = vpop.f32.mrb[2].mxu1 }
 0x2a8   :  { %272 = vadd.xlane.f32.xlu1 %v265_v37  ;;  %v495_v40 = vpop.f32.mrb[3].mxu1  ;;  %v274_v41 = vmul.f32 %v265_v37, %v265_v37 }
 0x2ac   :  { %275 = vadd.xlane.f32.xlu1 %v274_v41 }
 0x335   :  { %v273_v50 = vpop.xlane.xlu1 %272 }
 0x336   :  { %v277_v51 = vmul.f32 0.03125, %v273_v50 }
 0x338   :  { %v279_v53 = vmul.f32 %v277_v51, %v277_v51  ;;  %v281_v57 = vsub.f32 %v265_v37, %v277_v51 }
 0x339   :  { %v276_v52 = vpop.xlane.xlu1 %275 }
 0x33a   :  { %v278_v54 = vmul.f32 0.03125, %v276_v52 }
 0x33c   :  { %v280_v55 = vsub.f32 %v278_v54, %v279_v53 }
 0x33e   :  { %v282_v56 = vadd.f32 1e-05, %v280_v55 }
 0x340   :  { %544 = vrsqrt.f32 %v282_v56 }
 0x34a   :  { %v545_v58 = vpop.eup %544 }
 0x34b   :  { %v284_v60 = vmul.f32 %v545_v58, %v281_v57 }
 0x34d   :  { %v289_v62 = vmul.f32 %v439_v59, %v284_v60 }
 0x34f   :  { %v294_v63 = vadd.f32 %v440_v61, %v289_v62 }
 0x351   :  { %v295_v0 = vmax.f32 %v294_v63, 0.0 }
 0x353   :  { %v296_v1 = vpack.c.bf16 %v295_v0, %v295_v0 }
 0x355   :  { %513 = vmatmul.mubr.bf16.vlgmr.msra.gmra.mrb[4].mxu0 %v296_v1 }
 0x428   :  { %v400_v3 = vpop.f32.mrb[4].mxu0 }
 0x429   :  { %v401_v4 = vadd.f32 %v441_v2, %v400_v3  ;;  %v514_v5 = vpop.f32.mrb[5].mxu0 }
 0x42a   :  { %v403_v6 = vpop.f32.mrb[6].mxu0 }
 0x42b   :  { %546 = vtanh.f32 %v401_v4  ;;  %v515_v7 = vpop.f32.mrb[7].mxu0 }
 0x435   :  { %v547_v8 = vpop.eup %546 }
 0x436   :  { %407 = vst [vmem:[#allocation10] sm:$0xff] %v547_v8 }
 0x437   :  { %647 = shalt.err (!%p644_p8)
}
 0x438   :  { %s648_s7 = scalar_lea.hbm %s820_s5, 128 }
 0x439   :  { %p649_p9 = scmp.ne.s32.totalorder %s820_s5, %s648_s7  ;;  %p652_p10 = scmp.lt.u32.totalorder %s648_s7, %s820_s5 }
 0x43b   :  { %p654_p11 = pnand %p652_p10, %p649_p9 }
 0x43d   :  { %657 = shalt.err (!%p654_p11)
}
 0x43e   :  { %417 = dma.vmem_to_hbm [thread:$0]  %s415_s0, 128, %s820_s5, [#allocation4]  }
 0x43f   :  { %664 = dma.done.wait [#allocation4], 128  }
 0x440   :  { %665 = vsyncadd [#allocation4], 4294967168 }
 0x441   :  { %421 = vsyncpa [#allocation3], 1 }
 0x442   :  { %422 = vsyncpa [#allocation6], 1 }
 0x443   :  { %423 = vsyncpa [#allocation9], 1 }
 0x444   :  { %424 = vsyncpa [#allocation4], 1 }

</bundles_post_ra>
